<compile_context>
chip_gen: v5e
topology: v5e:2x2
jax: 0.10.0
libtpu: 0.0.40
codegen_flags: <defaults>
</compile_context>

<pallas_src>
import functools

import jax
import jax.numpy as jnp
from jax import lax
from jax.experimental import pallas as pl
from jax.experimental.pallas import tpu as pltpu

HIDDEN = 64


def csi_lstm_kernel(gx_ref, whh_ref, fcw_ref, fcb_ref,
                    ht_ref, out_ref, h_scr, c_scr, *, T, TC):
    """One grid step processes TC timesteps of the precomputed input projection.

    gx_ref  : (TC, B, 4H)  gates_x chunk = x_t @ W_ih.T + (b_ih + b_hh), order [i,f,o,g]
    whh_ref : (H, 4H)      W_hh.T (gate order [i,f,o,g])     -- resident
    fcw_ref : (H, A)       fc.weight.T                       -- resident
    fcb_ref : (1, A)       fc.bias                           -- resident
    ht_ref  : (B, H)       final hidden state (resident output)
    out_ref : (B, A)       fc(ht[-1])        (resident output)
    h_scr/c_scr : (B, H)   recurrent state, persists across grid steps
    """
    H = h_scr.shape[-1]
    chunk = pl.program_id(0)

    @pl.when(chunk == 0)
    def _init():
        h_scr[...] = jnp.zeros_like(h_scr)
        c_scr[...] = jnp.zeros_like(c_scr)

    whh = whh_ref[...]  # hoist: read the recurrent weight once per chunk

    def step(j, carry):
        h, c = carry
        gates = gx_ref[j] + jnp.dot(h, whh, preferred_element_type=jnp.float32)
        ifo = jax.nn.sigmoid(gates[:, :3 * H])      # one contiguous sigmoid slab
        g = jnp.tanh(gates[:, 3 * H:])              # one tanh slab
        i = ifo[:, 0 * H:1 * H]
        f = ifo[:, 1 * H:2 * H]
        o = ifo[:, 2 * H:3 * H]
        c_new = f * c + i * g
        h_new = o * jnp.tanh(c_new)
        if T % TC == 0:                             # static: no padded tail steps
            return h_new, c_new
        valid = (chunk * TC + j) < T                # mask padded tail steps
        return jnp.where(valid, h_new, h), jnp.where(valid, c_new, c)

    h, c = lax.fori_loop(0, TC, step, (h_scr[...], c_scr[...]), unroll=True)
    h_scr[...] = h
    c_scr[...] = c

    @pl.when(chunk == pl.num_programs(0) - 1)
    def _finalize():
        # Use the in-register `h` (no VMEM read-back) for both outputs.
        ht_ref[...] = h
        out_ref[...] = (jnp.dot(h, fcw_ref[...],
                                preferred_element_type=jnp.float32)
                        + fcb_ref[...])


def _reorder_gates(w):
    """[i, f, g, o] -> [i, f, o, g] along the gate (leading) axis."""
    i, f, g, o = jnp.split(w, 4, axis=0)
    return jnp.concatenate([i, f, o, g], axis=0)


def csi_lstm_forward(x, params, time_chunk=32):
    """x: (B, subcarrier, seq) float32 — same layout as the PyTorch module input."""
    B, S, T = x.shape
    H = HIDDEN
    A = params["fc_w"].shape[0]

    # Weight prep (wrapper-side, negligible): reorder gates to [i,f,o,g], transpose.
    w_ih_t = _reorder_gates(params["w_ih"]).T                       # (S, 4H)
    w_hh_t = _reorder_gates(params["w_hh"]).T                       # (H, 4H)
    bias = _reorder_gates(params["b_ih"] + params["b_hh"])          # (4H,)
    fcw_t = params["fc_w"].T                                        # (H, A)
    fcb = params["fc_b"][None, :]                                   # (1, A)

    # Input projection hoisted out of the recurrence; the 'bst,sg->tbg' contraction
    # also folds the (2,0,1) permute, so x is never transposed through HBM.
    x = x.astype(jnp.float32)
    gates_x = (jnp.einsum("bst,sg->tbg", x, w_ih_t,
                          preferred_element_type=jnp.float32)
               + bias[None, None, :])                               # (T, B, 4H)

    TC = min(T, time_chunk)
    num_chunks = -(-T // TC)
    T_pad = num_chunks * TC
    if T_pad != T:
        gates_x = jnp.pad(gates_x, ((0, T_pad - T), (0, 0), (0, 0)))

    kernel = functools.partial(csi_lstm_kernel, T=T, TC=TC)

    ht, outputs = pl.pallas_call(
        kernel,
        out_shape=(jax.ShapeDtypeStruct((B, H), jnp.float32),
                   jax.ShapeDtypeStruct((B, A), jnp.float32)),
        grid_spec=pltpu.PrefetchScalarGridSpec(
            num_scalar_prefetch=0,
            grid=(num_chunks,),
            in_specs=[
                pl.BlockSpec((TC, B, 4 * H), lambda t: (t, 0, 0)),  # streamed
                pl.BlockSpec((H, 4 * H), lambda t: (0, 0)),         # resident
                pl.BlockSpec((H, A), lambda t: (0, 0)),             # resident
                pl.BlockSpec((1, A), lambda t: (0, 0)),             # resident
            ],
            out_specs=(pl.BlockSpec((B, H), lambda t: (0, 0)),
                       pl.BlockSpec((B, A), lambda t: (0, 0))),
            scratch_shapes=[pltpu.VMEM((B, H), jnp.float32),
                            pltpu.VMEM((B, H), jnp.float32)],
        ),
        compiler_params=pltpu.CompilerParams(
            dimension_semantics=("arbitrary",)),                    # serial recurrence
    )(gates_x, w_hh_t, fcw_t, fcb)

    return ht[None], outputs   # ht: (num_layers=1, B, 64), outputs: (B, A)


def init_params(key, subcarrier_num, activity_num):
    """Deterministic init mimicking PyTorch's U(-1/sqrt(H), 1/sqrt(H))."""
    H = HIDDEN
    ks = jax.random.split(key, 6)
    bound = 1.0 / jnp.sqrt(jnp.float32(H))
    u = lambda k, shape: jax.random.uniform(k, shape, jnp.float32, -bound, bound)
    return {
        "w_ih": u(ks[0], (4 * H, subcarrier_num)),
        "w_hh": u(ks[1], (4 * H, H)),
        "b_ih": u(ks[2], (4 * H,)),
        "b_hh": u(ks[3], (4 * H,)),
        "fc_w": u(ks[4], (activity_num, H)),
        "fc_b": u(ks[5], (activity_num,)),
    }


def reference_forward(x, params):
    """Pure-JAX reference (PyTorch gate order [i,f,g,o]) for correctness checking."""
    H = HIDDEN
    xt = jnp.transpose(x, (2, 0, 1))                     # (T, B, S)
    T, B, _ = xt.shape
    bias = params["b_ih"] + params["b_hh"]

    def step(carry, x_t):
        h, c = carry
        gates = x_t @ params["w_ih"].T + h @ params["w_hh"].T + bias
        i = jax.nn.sigmoid(gates[:, 0 * H:1 * H])
        f = jax.nn.sigmoid(gates[:, 1 * H:2 * H])
        g = jnp.tanh(gates[:, 2 * H:3 * H])
        o = jax.nn.sigmoid(gates[:, 3 * H:4 * H])
        c = f * c + i * g
        h = o * jnp.tanh(c)
        return (h, c), None

    (h, c), _ = lax.scan(step, (jnp.zeros((B, H)), jnp.zeros((B, H))), xt)
    out = h @ params["fc_w"].T + params["fc_b"]
    return h[None], out


if __name__ == "__main__":
    batch, subcarrier_num, seq_len, activity_num = 2, 16, 8, 6

    key = jax.random.PRNGKey(0)
    kx, kp = jax.random.split(key)
    x = jax.random.normal(kx, (batch, subcarrier_num, seq_len), jnp.float32)
    params = init_params(kp, subcarrier_num, activity_num)

    ht, outputs = csi_lstm_forward(x, params)
    ht = jax.block_until_ready(ht)
    outputs = jax.block_until_ready(outputs)

    ht_ref, out_ref = reference_forward(x, params)
    assert ht.shape == (1, batch, HIDDEN)
    assert outputs.shape == (batch, activity_num)
    assert jnp.allclose(ht, ht_ref, atol=1e-4, rtol=1e-4)
    assert jnp.allclose(outputs, out_ref, atol=1e-4, rtol=1e-4)

    print("KERNEL_OK")
</pallas_src>

<mosaic_0001>
module attributes {stable_mosaic.version = 11 : i64} {
  func.func @csi_lstm_kernel(%arg0: i32, %arg1: memref<8x2x256xf32, #tpu.memory_space<vmem>>, %arg2: memref<64x256xf32, #tpu.memory_space<vmem>>, %arg3: memref<64x6xf32, #tpu.memory_space<vmem>>, %arg4: memref<1x6xf32, #tpu.memory_space<vmem>>, %arg5: memref<2x64xf32, #tpu.memory_space<vmem>>, %arg6: memref<2x6xf32, #tpu.memory_space<vmem>>, %arg7: memref<2x64xf32, #tpu.memory_space<vmem>>, %arg8: memref<2x64xf32, #tpu.memory_space<vmem>>) attributes {dimension_semantics = [#tpu.dimension_semantics<arbitrary>], iteration_bounds = array<i64: 1>, scalar_prefetch = 0 : i64, scratch_operands = 2 : i64, tpu.core_type = #tpu.core_type<tc>, window_params = [{transform_indices = @transform_0, window_bounds = array<i64: 8, 2, 256>}, {pipeline_mode = #tpu.pipeline_mode<synchronous>, transform_indices = @transform_1, window_bounds = array<i64: 64, 256>}, {pipeline_mode = #tpu.pipeline_mode<synchronous>, transform_indices = @transform_2, window_bounds = array<i64: 64, 6>}, {pipeline_mode = #tpu.pipeline_mode<synchronous>, transform_indices = @transform_3, window_bounds = array<i64: 1, 6>}, {pipeline_mode = #tpu.pipeline_mode<synchronous>, transform_indices = @transform_4, window_bounds = array<i64: 2, 64>}, {pipeline_mode = #tpu.pipeline_mode<synchronous>, transform_indices = @transform_5, window_bounds = array<i64: 2, 6>}]} {
    %c0_i32 = arith.constant 0 : i32
    %0 = arith.cmpi eq, %arg0, %c0_i32 : i32
    %1 = arith.extui %0 : i1 to i32
    %c0_i32_0 = arith.constant 0 : i32
    %2 = arith.cmpi ne, %1, %c0_i32_0 : i32
    scf.if %2 {
      %cst_44 = arith.constant 0.000000e+00 : f32
      %179 = vector.broadcast %cst_44 : f32 to vector<2x64xf32>
      %c0_45 = arith.constant 0 : index
      %c0_46 = arith.constant 0 : index
      %180 = vector.load %arg7[%c0_45, %c0_46] : memref<2x64xf32, #tpu.memory_space<vmem>>, vector<2x64xf32>
      tpu.vector_store %arg7[%c0_45, %c0_46], %179 {strides = array<i32>} : memref<2x64xf32, #tpu.memory_space<vmem>>, vector<2x64xf32>,
      %cst_47 = arith.constant 0.000000e+00 : f32
      %181 = vector.broadcast %cst_47 : f32 to vector<2x64xf32>
      %c0_48 = arith.constant 0 : index
      %c0_49 = arith.constant 0 : index
      %182 = vector.load %arg8[%c0_48, %c0_49] : memref<2x64xf32, #tpu.memory_space<vmem>>, vector<2x64xf32>
      tpu.vector_store %arg8[%c0_48, %c0_49], %181 {strides = array<i32>} : memref<2x64xf32, #tpu.memory_space<vmem>>, vector<2x64xf32>,
    } else {
    }
    %c0 = arith.constant 0 : index
    %c0_1 = arith.constant 0 : index
    %3 = vector.load %arg2[%c0, %c0_1] : memref<64x256xf32, #tpu.memory_space<vmem>>, vector<64x256xf32>
    %c0_2 = arith.constant 0 : index
    %c0_3 = arith.constant 0 : index
    %4 = vector.load %arg7[%c0_2, %c0_3] : memref<2x64xf32, #tpu.memory_space<vmem>>, vector<2x64xf32>
    %c0_4 = arith.constant 0 : index
    %c0_5 = arith.constant 0 : index
    %5 = vector.load %arg8[%c0_4, %c0_5] : memref<2x64xf32, #tpu.memory_space<vmem>>, vector<2x64xf32>
    %c0_i32_6 = arith.constant 0 : i32
    %6 = arith.index_cast %c0_i32_6 : i32 to index
    %c0_7 = arith.constant 0 : index
    %c0_8 = arith.constant 0 : index
    %7 = vector.load %arg1[%6, %c0_7, %c0_8] : memref<8x2x256xf32, #tpu.memory_space<vmem>>, vector<1x2x256xf32>
    %8 = vector.shape_cast %7 : vector<1x2x256xf32> to vector<2x256xf32>
    %cst = arith.constant dense<0.000000e+00> : vector<2x256xf32>
    %9 = tpu.matmul %4, %3, %cst {dimension_numbers = #tpu.dot_dimension_numbers<[1], [0], [0], [1], [0, 0, 1, 1], [], []>} : vector<2x64xf32>, vector<64x256xf32>, vector<2x256xf32> -> vector<2x256xf32>
    %10 = arith.addf %8, %9 : vector<2x256xf32>
    %11 = vector.extract_strided_slice %10 {offsets = [0, 0], sizes = [2, 192], strides = [1, 1]} : vector<2x256xf32> to vector<2x192xf32>
    %12 = arith.negf %11 : vector<2x192xf32>
    %13 = math.exp %12 : vector<2x192xf32>
    %cst_9 = arith.constant 1.000000e+00 : f32
    %14 = vector.broadcast %cst_9 : f32 to vector<2x192xf32>
    %15 = arith.addf %14, %13 : vector<2x192xf32>
    %16 = arith.divf %14, %15 : vector<2x192xf32>
    %17 = vector.extract_strided_slice %10 {offsets = [0, 192], sizes = [2, 64], strides = [1, 1]} : vector<2x256xf32> to vector<2x64xf32>
    %18 = math.tanh %17 : vector<2x64xf32>
    %19 = vector.extract_strided_slice %16 {offsets = [0, 0], sizes = [2, 64], strides = [1, 1]} : vector<2x192xf32> to vector<2x64xf32>
    %20 = vector.extract_strided_slice %16 {offsets = [0, 64], sizes = [2, 64], strides = [1, 1]} : vector<2x192xf32> to vector<2x64xf32>
    %21 = vector.extract_strided_slice %16 {offsets = [0, 128], sizes = [2, 64], strides = [1, 1]} : vector<2x192xf32> to vector<2x64xf32>
    %22 = arith.mulf %20, %5 : vector<2x64xf32>
    %23 = arith.mulf %19, %18 : vector<2x64xf32>
    %24 = arith.addf %22, %23 : vector<2x64xf32>
    %25 = math.tanh %24 : vector<2x64xf32>
    %26 = arith.mulf %21, %25 : vector<2x64xf32>
    %c1_i32 = arith.constant 1 : i32
    %27 = arith.index_cast %c1_i32 : i32 to index
    %c0_10 = arith.constant 0 : index
    %c0_11 = arith.constant 0 : index
    %28 = vector.load %arg1[%27, %c0_10, %c0_11] : memref<8x2x256xf32, #tpu.memory_space<vmem>>, vector<1x2x256xf32>
    %29 = vector.shape_cast %28 : vector<1x2x256xf32> to vector<2x256xf32>
    %cst_12 = arith.constant dense<0.000000e+00> : vector<2x256xf32>
    %30 = tpu.matmul %26, %3, %cst_12 {dimension_numbers = #tpu.dot_dimension_numbers<[1], [0], [0], [1], [0, 0, 1, 1], [], []>} : vector<2x64xf32>, vector<64x256xf32>, vector<2x256xf32> -> vector<2x256xf32>
    %31 = arith.addf %29, %30 : vector<2x256xf32>
    %32 = vector.extract_strided_slice %31 {offsets = [0, 0], sizes = [2, 192], strides = [1, 1]} : vector<2x256xf32> to vector<2x192xf32>
    %33 = arith.negf %32 : vector<2x192xf32>
    %34 = math.exp %33 : vector<2x192xf32>
    %cst_13 = arith.constant 1.000000e+00 : f32
    %35 = vector.broadcast %cst_13 : f32 to vector<2x192xf32>
    %36 = arith.addf %35, %34 : vector<2x192xf32>
    %37 = arith.divf %35, %36 : vector<2x192xf32>
    %38 = vector.extract_strided_slice %31 {offsets = [0, 192], sizes = [2, 64], strides = [1, 1]} : vector<2x256xf32> to vector<2x64xf32>
    %39 = math.tanh %38 : vector<2x64xf32>
    %40 = vector.extract_strided_slice %37 {offsets = [0, 0], sizes = [2, 64], strides = [1, 1]} : vector<2x192xf32> to vector<2x64xf32>
    %41 = vector.extract_strided_slice %37 {offsets = [0, 64], sizes = [2, 64], strides = [1, 1]} : vector<2x192xf32> to vector<2x64xf32>
    %42 = vector.extract_strided_slice %37 {offsets = [0, 128], sizes = [2, 64], strides = [1, 1]} : vector<2x192xf32> to vector<2x64xf32>
    %43 = arith.mulf %41, %24 : vector<2x64xf32>
    %44 = arith.mulf %40, %39 : vector<2x64xf32>
    %45 = arith.addf %43, %44 : vector<2x64xf32>
    %46 = math.tanh %45 : vector<2x64xf32>
    %47 = arith.mulf %42, %46 : vector<2x64xf32>
    %c2_i32 = arith.constant 2 : i32
    %48 = arith.index_cast %c2_i32 : i32 to index
    %c0_14 = arith.constant 0 : index
    %c0_15 = arith.constant 0 : index
    %49 = vector.load %arg1[%48, %c0_14, %c0_15] : memref<8x2x256xf32, #tpu.memory_space<vmem>>, vector<1x2x256xf32>
    %50 = vector.shape_cast %49 : vector<1x2x256xf32> to vector<2x256xf32>
    %cst_16 = arith.constant dense<0.000000e+00> : vector<2x256xf32>
    %51 = tpu.matmul %47, %3, %cst_16 {dimension_numbers = #tpu.dot_dimension_numbers<[1], [0], [0], [1], [0, 0, 1, 1], [], []>} : vector<2x64xf32>, vector<64x256xf32>, vector<2x256xf32> -> vector<2x256xf32>
    %52 = arith.addf %50, %51 : vector<2x256xf32>
    %53 = vector.extract_strided_slice %52 {offsets = [0, 0], sizes = [2, 192], strides = [1, 1]} : vector<2x256xf32> to vector<2x192xf32>
    %54 = arith.negf %53 : vector<2x192xf32>
    %55 = math.exp %54 : vector<2x192xf32>
    %cst_17 = arith.constant 1.000000e+00 : f32
    %56 = vector.broadcast %cst_17 : f32 to vector<2x192xf32>
    %57 = arith.addf %56, %55 : vector<2x192xf32>
    %58 = arith.divf %56, %57 : vector<2x192xf32>
    %59 = vector.extract_strided_slice %52 {offsets = [0, 192], sizes = [2, 64], strides = [1, 1]} : vector<2x256xf32> to vector<2x64xf32>
    %60 = math.tanh %59 : vector<2x64xf32>
    %61 = vector.extract_strided_slice %58 {offsets = [0, 0], sizes = [2, 64], strides = [1, 1]} : vector<2x192xf32> to vector<2x64xf32>
    %62 = vector.extract_strided_slice %58 {offsets = [0, 64], sizes = [2, 64], strides = [1, 1]} : vector<2x192xf32> to vector<2x64xf32>
    %63 = vector.extract_strided_slice %58 {offsets = [0, 128], sizes = [2, 64], strides = [1, 1]} : vector<2x192xf32> to vector<2x64xf32>
    %64 = arith.mulf %62, %45 : vector<2x64xf32>
    %65 = arith.mulf %61, %60 : vector<2x64xf32>
    %66 = arith.addf %64, %65 : vector<2x64xf32>
    %67 = math.tanh %66 : vector<2x64xf32>
    %68 = arith.mulf %63, %67 : vector<2x64xf32>
    %c3_i32 = arith.constant 3 : i32
    %69 = arith.index_cast %c3_i32 : i32 to index
    %c0_18 = arith.constant 0 : index
    %c0_19 = arith.constant 0 : index
    %70 = vector.load %arg1[%69, %c0_18, %c0_19] : memref<8x2x256xf32, #tpu.memory_space<vmem>>, vector<1x2x256xf32>
    %71 = vector.shape_cast %70 : vector<1x2x256xf32> to vector<2x256xf32>
    %cst_20 = arith.constant dense<0.000000e+00> : vector<2x256xf32>
    %72 = tpu.matmul %68, %3, %cst_20 {dimension_numbers = #tpu.dot_dimension_numbers<[1], [0], [0], [1], [0, 0, 1, 1], [], []>} : vector<2x64xf32>, vector<64x256xf32>, vector<2x256xf32> -> vector<2x256xf32>
    %73 = arith.addf %71, %72 : vector<2x256xf32>
    %74 = vector.extract_strided_slice %73 {offsets = [0, 0], sizes = [2, 192], strides = [1, 1]} : vector<2x256xf32> to vector<2x192xf32>
    %75 = arith.negf %74 : vector<2x192xf32>
    %76 = math.exp %75 : vector<2x192xf32>
    %cst_21 = arith.constant 1.000000e+00 : f32
    %77 = vector.broadcast %cst_21 : f32 to vector<2x192xf32>
    %78 = arith.addf %77, %76 : vector<2x192xf32>
    %79 = arith.divf %77, %78 : vector<2x192xf32>
    %80 = vector.extract_strided_slice %73 {offsets = [0, 192], sizes = [2, 64], strides = [1, 1]} : vector<2x256xf32> to vector<2x64xf32>
    %81 = math.tanh %80 : vector<2x64xf32>
    %82 = vector.extract_strided_slice %79 {offsets = [0, 0], sizes = [2, 64], strides = [1, 1]} : vector<2x192xf32> to vector<2x64xf32>
    %83 = vector.extract_strided_slice %79 {offsets = [0, 64], sizes = [2, 64], strides = [1, 1]} : vector<2x192xf32> to vector<2x64xf32>
    %84 = vector.extract_strided_slice %79 {offsets = [0, 128], sizes = [2, 64], strides = [1, 1]} : vector<2x192xf32> to vector<2x64xf32>
    %85 = arith.mulf %83, %66 : vector<2x64xf32>
    %86 = arith.mulf %82, %81 : vector<2x64xf32>
    %87 = arith.addf %85, %86 : vector<2x64xf32>
    %88 = math.tanh %87 : vector<2x64xf32>
    %89 = arith.mulf %84, %88 : vector<2x64xf32>
    %c4_i32 = arith.constant 4 : i32
    %90 = arith.index_cast %c4_i32 : i32 to index
    %c0_22 = arith.constant 0 : index
    %c0_23 = arith.constant 0 : index
    %91 = vector.load %arg1[%90, %c0_22, %c0_23] : memref<8x2x256xf32, #tpu.memory_space<vmem>>, vector<1x2x256xf32>
    %92 = vector.shape_cast %91 : vector<1x2x256xf32> to vector<2x256xf32>
    %cst_24 = arith.constant dense<0.000000e+00> : vector<2x256xf32>
    %93 = tpu.matmul %89, %3, %cst_24 {dimension_numbers = #tpu.dot_dimension_numbers<[1], [0], [0], [1], [0, 0, 1, 1], [], []>} : vector<2x64xf32>, vector<64x256xf32>, vector<2x256xf32> -> vector<2x256xf32>
    %94 = arith.addf %92, %93 : vector<2x256xf32>
    %95 = vector.extract_strided_slice %94 {offsets = [0, 0], sizes = [2, 192], strides = [1, 1]} : vector<2x256xf32> to vector<2x192xf32>
    %96 = arith.negf %95 : vector<2x192xf32>
    %97 = math.exp %96 : vector<2x192xf32>
    %cst_25 = arith.constant 1.000000e+00 : f32
    %98 = vector.broadcast %cst_25 : f32 to vector<2x192xf32>
    %99 = arith.addf %98, %97 : vector<2x192xf32>
    %100 = arith.divf %98, %99 : vector<2x192xf32>
    %101 = vector.extract_strided_slice %94 {offsets = [0, 192], sizes = [2, 64], strides = [1, 1]} : vector<2x256xf32> to vector<2x64xf32>
    %102 = math.tanh %101 : vector<2x64xf32>
    %103 = vector.extract_strided_slice %100 {offsets = [0, 0], sizes = [2, 64], strides = [1, 1]} : vector<2x192xf32> to vector<2x64xf32>
    %104 = vector.extract_strided_slice %100 {offsets = [0, 64], sizes = [2, 64], strides = [1, 1]} : vector<2x192xf32> to vector<2x64xf32>
    %105 = vector.extract_strided_slice %100 {offsets = [0, 128], sizes = [2, 64], strides = [1, 1]} : vector<2x192xf32> to vector<2x64xf32>
    %106 = arith.mulf %104, %87 : vector<2x64xf32>
    %107 = arith.mulf %103, %102 : vector<2x64xf32>
    %108 = arith.addf %106, %107 : vector<2x64xf32>
    %109 = math.tanh %108 : vector<2x64xf32>
    %110 = arith.mulf %105, %109 : vector<2x64xf32>
    %c5_i32 = arith.constant 5 : i32
    %111 = arith.index_cast %c5_i32 : i32 to index
    %c0_26 = arith.constant 0 : index
    %c0_27 = arith.constant 0 : index
    %112 = vector.load %arg1[%111, %c0_26, %c0_27] : memref<8x2x256xf32, #tpu.memory_space<vmem>>, vector<1x2x256xf32>
    %113 = vector.shape_cast %112 : vector<1x2x256xf32> to vector<2x256xf32>
    %cst_28 = arith.constant dense<0.000000e+00> : vector<2x256xf32>
    %114 = tpu.matmul %110, %3, %cst_28 {dimension_numbers = #tpu.dot_dimension_numbers<[1], [0], [0], [1], [0, 0, 1, 1], [], []>} : vector<2x64xf32>, vector<64x256xf32>, vector<2x256xf32> -> vector<2x256xf32>
    %115 = arith.addf %113, %114 : vector<2x256xf32>
    %116 = vector.extract_strided_slice %115 {offsets = [0, 0], sizes = [2, 192], strides = [1, 1]} : vector<2x256xf32> to vector<2x192xf32>
    %117 = arith.negf %116 : vector<2x192xf32>
    %118 = math.exp %117 : vector<2x192xf32>
    %cst_29 = arith.constant 1.000000e+00 : f32
    %119 = vector.broadcast %cst_29 : f32 to vector<2x192xf32>
    %120 = arith.addf %119, %118 : vector<2x192xf32>
    %121 = arith.divf %119, %120 : vector<2x192xf32>
    %122 = vector.extract_strided_slice %115 {offsets = [0, 192], sizes = [2, 64], strides = [1, 1]} : vector<2x256xf32> to vector<2x64xf32>
    %123 = math.tanh %122 : vector<2x64xf32>
    %124 = vector.extract_strided_slice %121 {offsets = [0, 0], sizes = [2, 64], strides = [1, 1]} : vector<2x192xf32> to vector<2x64xf32>
    %125 = vector.extract_strided_slice %121 {offsets = [0, 64], sizes = [2, 64], strides = [1, 1]} : vector<2x192xf32> to vector<2x64xf32>
    %126 = vector.extract_strided_slice %121 {offsets = [0, 128], sizes = [2, 64], strides = [1, 1]} : vector<2x192xf32> to vector<2x64xf32>
    %127 = arith.mulf %125, %108 : vector<2x64xf32>
    %128 = arith.mulf %124, %123 : vector<2x64xf32>
    %129 = arith.addf %127, %128 : vector<2x64xf32>
    %130 = math.tanh %129 : vector<2x64xf32>
    %131 = arith.mulf %126, %130 : vector<2x64xf32>
    %c6_i32 = arith.constant 6 : i32
    %132 = arith.index_cast %c6_i32 : i32 to index
    %c0_30 = arith.constant 0 : index
    %c0_31 = arith.constant 0 : index
    %133 = vector.load %arg1[%132, %c0_30, %c0_31] : memref<8x2x256xf32, #tpu.memory_space<vmem>>, vector<1x2x256xf32>
    %134 = vector.shape_cast %133 : vector<1x2x256xf32> to vector<2x256xf32>
    %cst_32 = arith.constant dense<0.000000e+00> : vector<2x256xf32>
    %135 = tpu.matmul %131, %3, %cst_32 {dimension_numbers = #tpu.dot_dimension_numbers<[1], [0], [0], [1], [0, 0, 1, 1], [], []>} : vector<2x64xf32>, vector<64x256xf32>, vector<2x256xf32> -> vector<2x256xf32>
    %136 = arith.addf %134, %135 : vector<2x256xf32>
    %137 = vector.extract_strided_slice %136 {offsets = [0, 0], sizes = [2, 192], strides = [1, 1]} : vector<2x256xf32> to vector<2x192xf32>
    %138 = arith.negf %137 : vector<2x192xf32>
    %139 = math.exp %138 : vector<2x192xf32>
    %cst_33 = arith.constant 1.000000e+00 : f32
    %140 = vector.broadcast %cst_33 : f32 to vector<2x192xf32>
    %141 = arith.addf %140, %139 : vector<2x192xf32>
    %142 = arith.divf %140, %141 : vector<2x192xf32>
    %143 = vector.extract_strided_slice %136 {offsets = [0, 192], sizes = [2, 64], strides = [1, 1]} : vector<2x256xf32> to vector<2x64xf32>
    %144 = math.tanh %143 : vector<2x64xf32>
    %145 = vector.extract_strided_slice %142 {offsets = [0, 0], sizes = [2, 64], strides = [1, 1]} : vector<2x192xf32> to vector<2x64xf32>
    %146 = vector.extract_strided_slice %142 {offsets = [0, 64], sizes = [2, 64], strides = [1, 1]} : vector<2x192xf32> to vector<2x64xf32>
    %147 = vector.extract_strided_slice %142 {offsets = [0, 128], sizes = [2, 64], strides = [1, 1]} : vector<2x192xf32> to vector<2x64xf32>
    %148 = arith.mulf %146, %129 : vector<2x64xf32>
    %149 = arith.mulf %145, %144 : vector<2x64xf32>
    %150 = arith.addf %148, %149 : vector<2x64xf32>
    %151 = math.tanh %150 : vector<2x64xf32>
    %152 = arith.mulf %147, %151 : vector<2x64xf32>
    %c7_i32 = arith.constant 7 : i32
    %153 = arith.index_cast %c7_i32 : i32 to index
    %c0_34 = arith.constant 0 : index
    %c0_35 = arith.constant 0 : index
    %154 = vector.load %arg1[%153, %c0_34, %c0_35] : memref<8x2x256xf32, #tpu.memory_space<vmem>>, vector<1x2x256xf32>
    %155 = vector.shape_cast %154 : vector<1x2x256xf32> to vector<2x256xf32>
    %cst_36 = arith.constant dense<0.000000e+00> : vector<2x256xf32>
    %156 = tpu.matmul %152, %3, %cst_36 {dimension_numbers = #tpu.dot_dimension_numbers<[1], [0], [0], [1], [0, 0, 1, 1], [], []>} : vector<2x64xf32>, vector<64x256xf32>, vector<2x256xf32> -> vector<2x256xf32>
    %157 = arith.addf %155, %156 : vector<2x256xf32>
    %158 = vector.extract_strided_slice %157 {offsets = [0, 0], sizes = [2, 192], strides = [1, 1]} : vector<2x256xf32> to vector<2x192xf32>
    %159 = arith.negf %158 : vector<2x192xf32>
    %160 = math.exp %159 : vector<2x192xf32>
    %cst_37 = arith.constant 1.000000e+00 : f32
    %161 = vector.broadcast %cst_37 : f32 to vector<2x192xf32>
    %162 = arith.addf %161, %160 : vector<2x192xf32>
    %163 = arith.divf %161, %162 : vector<2x192xf32>
    %164 = vector.extract_strided_slice %157 {offsets = [0, 192], sizes = [2, 64], strides = [1, 1]} : vector<2x256xf32> to vector<2x64xf32>
    %165 = math.tanh %164 : vector<2x64xf32>
    %166 = vector.extract_strided_slice %163 {offsets = [0, 0], sizes = [2, 64], strides = [1, 1]} : vector<2x192xf32> to vector<2x64xf32>
    %167 = vector.extract_strided_slice %163 {offsets = [0, 64], sizes = [2, 64], strides = [1, 1]} : vector<2x192xf32> to vector<2x64xf32>
    %168 = vector.extract_strided_slice %163 {offsets = [0, 128], sizes = [2, 64], strides = [1, 1]} : vector<2x192xf32> to vector<2x64xf32>
    %169 = arith.mulf %167, %150 : vector<2x64xf32>
    %170 = arith.mulf %166, %165 : vector<2x64xf32>
    %171 = arith.addf %169, %170 : vector<2x64xf32>
    %172 = math.tanh %171 : vector<2x64xf32>
    %173 = arith.mulf %168, %172 : vector<2x64xf32>
    %c8_i32 = arith.constant 8 : i32
    %c0_38 = arith.constant 0 : index
    %c0_39 = arith.constant 0 : index
    %174 = vector.load %arg7[%c0_38, %c0_39] : memref<2x64xf32, #tpu.memory_space<vmem>>, vector<2x64xf32>
    tpu.vector_store %arg7[%c0_38, %c0_39], %173 {strides = array<i32>} : memref<2x64xf32, #tpu.memory_space<vmem>>, vector<2x64xf32>,
    %c0_40 = arith.constant 0 : index
    %c0_41 = arith.constant 0 : index
    %175 = vector.load %arg8[%c0_40, %c0_41] : memref<2x64xf32, #tpu.memory_space<vmem>>, vector<2x64xf32>
    tpu.vector_store %arg8[%c0_40, %c0_41], %171 {strides = array<i32>} : memref<2x64xf32, #tpu.memory_space<vmem>>, vector<2x64xf32>,
    %c0_i32_42 = arith.constant 0 : i32
    %176 = arith.cmpi eq, %arg0, %c0_i32_42 : i32
    %177 = arith.extui %176 : i1 to i32
    %c0_i32_43 = arith.constant 0 : i32
    %178 = arith.cmpi ne, %177, %c0_i32_43 : i32
    scf.if %178 {
      %c0_44 = arith.constant 0 : index
      %c0_45 = arith.constant 0 : index
      %179 = vector.load %arg5[%c0_44, %c0_45] : memref<2x64xf32, #tpu.memory_space<vmem>>, vector<2x64xf32>
      tpu.vector_store %arg5[%c0_44, %c0_45], %173 {strides = array<i32>} : memref<2x64xf32, #tpu.memory_space<vmem>>, vector<2x64xf32>,
      %c0_46 = arith.constant 0 : index
      %c0_47 = arith.constant 0 : index
      %180 = vector.load %arg3[%c0_46, %c0_47] : memref<64x6xf32, #tpu.memory_space<vmem>>, vector<64x6xf32>
      %cst_48 = arith.constant dense<0.000000e+00> : vector<2x6xf32>
      %181 = tpu.matmul %173, %180, %cst_48 {dimension_numbers = #tpu.dot_dimension_numbers<[1], [0], [0], [1], [0, 0, 1, 1], [], []>} : vector<2x64xf32>, vector<64x6xf32>, vector<2x6xf32> -> vector<2x6xf32>
      %c0_49 = arith.constant 0 : index
      %c0_50 = arith.constant 0 : index
      %182 = vector.load %arg4[%c0_49, %c0_50] : memref<1x6xf32, #tpu.memory_space<vmem>>, vector<1x6xf32>
      %183 = vector.broadcast %182 : vector<1x6xf32> to vector<2x6xf32>
      %184 = arith.addf %181, %183 : vector<2x6xf32>
      %c0_51 = arith.constant 0 : index
      %c0_52 = arith.constant 0 : index
      %185 = vector.load %arg6[%c0_51, %c0_52] : memref<2x6xf32, #tpu.memory_space<vmem>>, vector<2x6xf32>
      tpu.vector_store %arg6[%c0_51, %c0_52], %184 {strides = array<i32>} : memref<2x6xf32, #tpu.memory_space<vmem>>, vector<2x6xf32>,
    } else {
    }
    return
  }
  func.func @transform_0(%arg0: i32) -> (i32, i32, i32) {
    %c0_i32 = arith.constant 0 : i32
    %c0_i32_0 = arith.constant 0 : i32
    %c0_i32_1 = arith.constant 0 : i32
    return %arg0, %c0_i32, %c0_i32_0 : i32, i32, i32
  }
  func.func @transform_1(%arg0: i32) -> (i32, i32) {
    %c0_i32 = arith.constant 0 : i32
    %c0_i32_0 = arith.constant 0 : i32
    %c0_i32_1 = arith.constant 0 : i32
    return %c0_i32, %c0_i32_0 : i32, i32
  }
  func.func @transform_2(%arg0: i32) -> (i32, i32) {
    %c0_i32 = arith.constant 0 : i32
    %c0_i32_0 = arith.constant 0 : i32
    %c0_i32_1 = arith.constant 0 : i32
    return %c0_i32, %c0_i32_0 : i32, i32
  }
  func.func @transform_3(%arg0: i32) -> (i32, i32) {
    %c0_i32 = arith.constant 0 : i32
    %c0_i32_0 = arith.constant 0 : i32
    %c0_i32_1 = arith.constant 0 : i32
    return %c0_i32, %c0_i32_0 : i32, i32
  }
  func.func @transform_4(%arg0: i32) -> (i32, i32) {
    %c0_i32 = arith.constant 0 : i32
    %c0_i32_0 = arith.constant 0 : i32
    %c0_i32_1 = arith.constant 0 : i32
    return %c0_i32, %c0_i32_0 : i32, i32
  }
  func.func @transform_5(%arg0: i32) -> (i32, i32) {
    %c0_i32 = arith.constant 0 : i32
    %c0_i32_0 = arith.constant 0 : i32
    %c0_i32_1 = arith.constant 0 : i32
    return %c0_i32, %c0_i32_0 : i32, i32
  }
}

</mosaic_0001>

<bundles_post_ra>
// kernel: tpu_custom_call.1
= control target key start
LH: loop header
LB: loop body
LE: loop exit
PB: predicated region body
PF: predicated region fallthrough
CT: control target
= control target key end

     0   :  { %11 = vsyncpa [#allocation5], 0  ;;  %s1381_s0 = inlined_call_operand.vmem [shape: f32[8,2,256], index: 0, kind: input, shape index: {}]   ;;  %s1382_s1 = inlined_call_operand.hbm [shape: f32[64,256], index: 1, kind: input, shape index: {}]   ;;  %s1383_s2 = inlined_call_operand.vmem [shape: f32[64,6], index: 2, kind: input, shape index: {}]   ;;  %s1384_s3 = inlined_call_operand.vmem [shape: f32[1,6], index: 3, kind: input, shape index: {}]   ;;  %s1385_s4 = inlined_call_operand.hbm [shape: f32[2,64], index: 4, kind: output, shape index: {0}]   ;;  %s1386_s5 = inlined_call_operand.hbm [shape: f32[2,6], index: 5, kind: output, shape index: {1}]  }
   0x1   :  { %12 = vsyncpa [#allocation6], 0 }
   0x2   :  { %13 = vsyncpa [#allocation9], 0  ;;  %s20_s20 = sshll.u32 %s1382_s1, 4  ;;  %s1068_s21 = smov [#allocation4]   ;;  %s21_s20 = int_to_ptr.hbm [resolvable:$true] %s20_s20 }
   0x3   :  { %s22_s22 = sshll.u32 %s1068_s21, 4  ;;  %s1069_s23 = smov 256   ;;  %s23_s22 = int_to_ptr.vmem [resolvable:$true] %s22_s22 }
   0x4   :  { %s1070_s24 = smov 16  }
   0x5   :  { %28 = dma.hbm_to_vmem [thread:$0]  %s21_s20, 2048, %s23_s22, [#allocation5], %s1069_s23, %s1069_s23, %s1070_s24  }
   0x6   :  { %1062 = dma.done.wait [#allocation5], 2048  }
   0x7   :  { %1063 = vsyncadd [#allocation5], 4294965248  ;;  %vm41_vm0 = vcmask 517120   ;;  %v1071_v0 = vmov 0.0   ;;  %v1110_v1 = vld [vmem:[#allocation4 + $0x78] sm:$0xff]  ;;  %v1112_v2 = vld [vmem:[#allocation4 + $0x70] sm:$0xff] }
   0x8   :  { %42 = vst.msk [vmem:[#allocation2] sm:$0x3] %vm41_vm0, %v1071_v0  ;;  %v1114_v3 = vld [vmem:[#allocation4 + $0x68] sm:$0xff]  ;;  %95 = vmatpush.msra.mxu1 %v1110_v1  ;;  %75 = vmatpush.msra.mxu0 %v1112_v2  ;;  %v1118_v4 = vld [vmem:[#allocation4 + $0x60] sm:$0xff]  ;;  %v1120_v5 = vld [vmem:[#allocation4 + $0x58] sm:$0xff]  ;;  %vm63_vm1 = vcmask 523264  }
   0x9   :  { %43 = vst.msk [vmem:[#allocation3] sm:$0x3] %vm41_vm0, %v1071_v0  ;;  %v1122_v6 = vld [vmem:[#allocation4 + $0x50] sm:$0xff]  ;;  %172 = vmatpush.msra.mxu2 %v1112_v2  ;;  %192 = vmatpush.msra.mxu3 %v1110_v1  ;;  %v1128_v7 = vld [vmem:[#allocation4 + $0x48] sm:$0xff]  ;;  %v1130_v8 = vld [vmem:[#allocation4 + $0x40] sm:$0xff]  ;;  %vm110_vm2 = vcmask 1041408  }
   0xa   :  { %96 = vmatpush.msra.mxu1 %v1114_v3  ;;  %76 = vmatpush.msra.mxu0 %v1118_v4  ;;  %v1136_v9 = vld [vmem:[#allocation4 + $0x38] sm:$0xff]  ;;  %v1138_v10 = vld [vmem:[#allocation4 + $0x30] sm:$0xff]  ;;  %v1144_v11 = vld [vmem:[#allocation4 + $0x28] sm:$0xff]  ;;  %s1072_s26 = smov 64   ;;  %s860_s8 = sshll.u32 %s1385_s4, 4  ;;  %s861_s8 = int_to_ptr.hbm [resolvable:$true] %s860_s8 }
   0xb   :  { %173 = vmatpush.msra.mxu2 %v1118_v4  ;;  %193 = vmatpush.msra.mxu3 %v1114_v3  ;;  %v1146_v12 = vld [vmem:[#allocation4 + $0x20] sm:$0xff]  ;;  %v1152_v13 = vld [vmem:[#allocation4 + $0x18] sm:$0xff]  ;;  %v1154_v14 = vld [vmem:[#allocation4 + $0x10] sm:$0xff]  ;;  %s1073_s9 = smov [#allocation7]   ;;  %s1074_s11 = smov [#allocation8]  }
   0xc   :  { %97 = vmatpush.msra.mxu1 %v1120_v5  ;;  %77 = vmatpush.msra.mxu0 %v1122_v6  ;;  %v1160_v15 = vld [vmem:[#allocation4 + $0x8] sm:$0xff]  ;;  %v1162_v16 = vld [vmem:[#allocation4] sm:$0xff]  ;;  %v62_v21 = vld [vmem:[%s1381_s0] sm:$0xf]  ;;  %s858_s10 = sshll.u32 %s1073_s9, 4  ;;  %s869_s12 = sshll.u32 %s1074_s11, 4  ;;  %s859_s10 = int_to_ptr.vmem [resolvable:$true] %s858_s10  ;;  %s870_s12 = int_to_ptr.vmem [resolvable:$true] %s869_s12 }
   0xd   :  { %174 = vmatpush.msra.mxu2 %v1122_v6  ;;  %194 = vmatpush.msra.mxu3 %v1120_v5  ;;  %v889_v52 = vld [vmem:[%s1381_s0 + $0x4] sm:$0xf]  ;;  %s871_s14 = sshll.u32 %s1386_s5, 4  ;;  %s872_s14 = int_to_ptr.hbm [resolvable:$true] %s871_s14 }
   0xe   :  { %98 = vmatpush.msra.mxu1 %v1128_v7  ;;  %78 = vmatpush.msra.mxu0 %v1130_v8 }
   0xf   :  { %175 = vmatpush.msra.mxu2 %v1130_v8  ;;  %195 = vmatpush.msra.mxu3 %v1128_v7  ;;  %v60_v17 = vld [vmem:[#allocation2] sm:$0x3] }
  0x10   :  { %99 = vmatpush.msra.mxu1 %v1136_v9  ;;  %79 = vmatpush.msra.mxu0 %v1138_v10  ;;  %v61_v24 = vld [vmem:[#allocation3] sm:$0x3] }
  0x11   :  { %176 = vmatpush.msra.mxu2 %v1138_v10  ;;  %196 = vmatpush.msra.mxu3 %v1136_v9 }
  0x12   :  { %100 = vmatpush.msra.mxu1 %v1144_v11  ;;  %80 = vmatpush.msra.mxu0 %v1146_v12 }
  0x13   :  { %177 = vmatpush.msra.mxu2 %v1146_v12  ;;  %197 = vmatpush.msra.mxu3 %v1144_v11 }
  0x14   :  { %101 = vmatpush.msra.mxu1 %v1152_v13  ;;  %81 = vmatpush.msra.mxu0 %v1154_v14 }
  0x15   :  { %178 = vmatpush.msra.mxu2 %v1154_v14  ;;  %198 = vmatpush.msra.mxu3 %v1152_v13 }
  0x16   :  { %102 = vmatpush.msra.mxu1 %v1160_v15  ;;  %82 = vmatpush.msra.mxu0 %v1162_v16 }
  0x17   :  { %887 = vmatmul.msk.f32.vlgmr.msra.gmra.mxu1 %vm63_vm1, %v60_v17  ;;  %886 = vmatmul.msk.f32.vlgmr.msra.gmra.mxu0 %vm63_vm1, %v60_v17 }
  0x18   :  { %179 = vmatpush.msra.mxu2 %v1162_v16  ;;  %199 = vmatpush.msra.mxu3 %v1160_v15 }
  0x19   :  { %264 = vmatpush.msrb.mxu0 %v1112_v2  ;;  %284 = vmatpush.msrb.mxu1 %v1110_v1 }
  0x1a   :  { %356 = vmatpush.msrb.mxu2 %v1112_v2  ;;  %376 = vmatpush.msrb.mxu3 %v1110_v1 }
  0x1b   :  { %265 = vmatpush.msrb.mxu0 %v1118_v4  ;;  %285 = vmatpush.msrb.mxu1 %v1114_v3 }
  0x1c   :  { %357 = vmatpush.msrb.mxu2 %v1118_v4  ;;  %377 = vmatpush.msrb.mxu3 %v1114_v3 }
  0x1d   :  { %266 = vmatpush.msrb.mxu0 %v1122_v6  ;;  %286 = vmatpush.msrb.mxu1 %v1120_v5 }
  0x1e   :  { %358 = vmatpush.msrb.mxu2 %v1122_v6  ;;  %378 = vmatpush.msrb.mxu3 %v1120_v5 }
  0x1f   :  { %267 = vmatpush.msrb.mxu0 %v1130_v8  ;;  %287 = vmatpush.msrb.mxu1 %v1128_v7 }
  0x20   :  { %359 = vmatpush.msrb.mxu2 %v1130_v8  ;;  %379 = vmatpush.msrb.mxu3 %v1128_v7 }
  0x21   :  { %268 = vmatpush.msrb.mxu0 %v1138_v10  ;;  %288 = vmatpush.msrb.mxu1 %v1136_v9 }
  0x22   :  { %360 = vmatpush.msrb.mxu2 %v1138_v10  ;;  %380 = vmatpush.msrb.mxu3 %v1136_v9 }
  0x23   :  { %269 = vmatpush.msrb.mxu0 %v1146_v12  ;;  %289 = vmatpush.msrb.mxu1 %v1144_v11 }
  0x24   :  { %361 = vmatpush.msrb.mxu2 %v1146_v12  ;;  %381 = vmatpush.msrb.mxu3 %v1144_v11 }
  0x25   :  { %270 = vmatpush.msrb.mxu0 %v1154_v14  ;;  %290 = vmatpush.msrb.mxu1 %v1152_v13 }
  0x26   :  { %362 = vmatpush.msrb.mxu2 %v1154_v14  ;;  %382 = vmatpush.msrb.mxu3 %v1152_v13 }
  0x27   :  { %271 = vmatpush.msrb.mxu0 %v1162_v16  ;;  %291 = vmatpush.msrb.mxu1 %v1160_v15 }
  0x28   :  { %363 = vmatpush.msrb.mxu2 %v1162_v16  ;;  %383 = vmatpush.msrb.mxu3 %v1160_v15 }
  0x29   :  { %448 = vmatpush.msra.mxu0 %v1112_v2  ;;  %468 = vmatpush.msra.mxu1 %v1110_v1 }
  0x2b   :  { %449 = vmatpush.msra.mxu0 %v1118_v4  ;;  %469 = vmatpush.msra.mxu1 %v1114_v3 }
  0x2d   :  { %450 = vmatpush.msra.mxu0 %v1122_v6  ;;  %470 = vmatpush.msra.mxu1 %v1120_v5 }
  0x2f   :  { %451 = vmatpush.msra.mxu0 %v1130_v8  ;;  %471 = vmatpush.msra.mxu1 %v1128_v7 }
  0x31   :  { %452 = vmatpush.msra.mxu0 %v1138_v10  ;;  %472 = vmatpush.msra.mxu1 %v1136_v9 }
  0x33   :  { %453 = vmatpush.msra.mxu0 %v1146_v12  ;;  %473 = vmatpush.msra.mxu1 %v1144_v11 }
  0x35   :  { %454 = vmatpush.msra.mxu0 %v1154_v14  ;;  %474 = vmatpush.msra.mxu1 %v1152_v13 }
  0x37   :  { %455 = vmatpush.msra.mxu0 %v1162_v16  ;;  %475 = vmatpush.msra.mxu1 %v1160_v15 }
  0x94   :  { %v104_v18 = vpop.f32.mrf.mxu1  ;;  %v84_v19 = vpop.f32.mrf.mxu0 }
  0x95   :  { %v109_v20 = vrot.slane %v104_v18, 6 }
  0x97   :  { %v111_v22 = vsel %vm110_vm2, %v84_v19, %v109_v20 }
  0x98   :  { %v113_v23 = vadd.f32 %v111_v22, %v62_v21 }
  0x9a   :  { %134 = vrot.lane.b32.xlu0 %v113_v23, %s1072_s26  ;;  %v888_v25 = vmul.f32 -1.442695, %v113_v23 }
  0x9c   :  { %926 = vpow2.f32 %v888_v25 }
  0xa2   :  { %140 = vrot.lane.b32.xlu0 %v61_v24, %s1072_s26  ;;  %v927_v26 = vpop.eup %926 }
  0xa3   :  { %v117_v27 = vadd.f32 1.0, %v927_v26 }
  0xa5   :  { %928 = vrcp.f32 %v117_v27  ;;  %v129_v35 = vand.u32 2147483648, %v117_v27  ;;  %vm123_vm4 = vweird.f32 %v117_v27  ;;  %v127_v36 = vand.u32 2147483647, %v117_v27 }
  0xa7   :  { %v130_v38 = vor.u32 1.1754944e-38, %v129_v35  ;;  %vm128_vm6 = vcmp.eq.f32.partialorder %v127_v36, 8.507059e+37 }
  0xab   :  { %v929_v28 = vpop.eup %928 }
  0xac   :  { %v119_v29 = vmul.f32 %v929_v28, %v117_v27  ;;  %vm124_vm3 = vweird.f32 %v929_v28 }
  0xad   :  { %vm125_vm5 = vmor %vm123_vm4, %vm124_vm3 }
  0xae   :  { %v120_v30 = vsub.f32 1.0, %v119_v29 }
  0xb0   :  { %v121_v31 = vmul.f32 %v929_v28, %v120_v30 }
  0xb2   :  { %v122_v34 = vadd.f32 %v929_v28, %v121_v31 }
  0xb4   :  { %v126_v37 = vsel %vm125_vm5, %v929_v28, %v122_v34  ;;  %v893_v34 = vld [vmem:[%s1381_s0 + $0x8] sm:$0xf] }
  0xb5   :  { %v131_v40 = vsel %vm128_vm6, %v130_v38, %v126_v37 }
  0xb6   :  { %v152_v47 = vrot.slane %v131_v40, 2 }
 0x10c   :  { %v135_v32 = vpop.permute.xlu0 %134 }
 0x10d   :  { %v136_v33 = vrot.slane %v135_v32, 2 }
 0x10f   :  { %930 = vtanh.f32 %v136_v33 }
 0x114   :  { %v141_v42 = vpop.permute.xlu0 %140 }
 0x115   :  { %v931_v39 = vpop.eup %930  ;;  %v143_v43 = vmul.f32 %v141_v42, %v131_v40 }
 0x116   :  { %v144_v41 = vmul.f32 %v931_v39, %v131_v40 }
 0x118   :  { %146 = vrot.lane.b32.xlu1 %v144_v41, %s1072_s26 }
 0x18a   :  { %v147_v44 = vpop.permute.xlu1 %146 }
 0x18b   :  { %v149_v45 = vadd.f32 %v147_v44, %v143_v43 }
 0x18d   :  { %932 = vtanh.f32 %v149_v45 }
 0x193   :  { %v933_v46 = vpop.eup %932 }
 0x194   :  { %155 = vrot.lane.b32.xlu1 %v933_v46, %s1072_s26 }
 0x206   :  { %v156_v48 = vpop.permute.xlu1 %155 }
 0x207   :  { %v158_v49 = vmul.f32 %v156_v48, %v152_v47 }
 0x209   :  { %890 = vmatmul.msk.f32.vlgmr.msra.gmra.mxu2 %vm63_vm1, %v158_v49  ;;  %891 = vmatmul.msk.f32.vlgmr.msra.gmra.mxu3 %vm63_vm1, %v158_v49 }
 0x20a   :  { %540 = vmatpush.msra.mxu2 %v1112_v2  ;;  %560 = vmatpush.msra.mxu3 %v1110_v1 }
 0x20c   :  { %541 = vmatpush.msra.mxu2 %v1118_v4  ;;  %561 = vmatpush.msra.mxu3 %v1114_v3 }
 0x20e   :  { %542 = vmatpush.msra.mxu2 %v1122_v6  ;;  %562 = vmatpush.msra.mxu3 %v1120_v5 }
 0x210   :  { %543 = vmatpush.msra.mxu2 %v1130_v8  ;;  %563 = vmatpush.msra.mxu3 %v1128_v7 }
 0x212   :  { %544 = vmatpush.msra.mxu2 %v1138_v10  ;;  %564 = vmatpush.msra.mxu3 %v1136_v9 }
 0x214   :  { %545 = vmatpush.msra.mxu2 %v1146_v12  ;;  %565 = vmatpush.msra.mxu3 %v1144_v11 }
 0x216   :  { %546 = vmatpush.msra.mxu2 %v1154_v14  ;;  %566 = vmatpush.msra.mxu3 %v1152_v13 }
 0x218   :  { %547 = vmatpush.msra.mxu2 %v1162_v16  ;;  %567 = vmatpush.msra.mxu3 %v1160_v15 }
 0x28c   :  { %v201_v50 = vpop.f32.mrf.mxu3  ;;  %v181_v53 = vpop.f32.mrf.mxu2 }
 0x28d   :  { %v206_v51 = vrot.slane %v201_v50, 6 }
 0x28f   :  { %v207_v54 = vsel %vm110_vm2, %v181_v53, %v206_v51 }
 0x290   :  { %v209_v55 = vadd.f32 %v889_v52, %v207_v54 }
 0x292   :  { %230 = vrot.lane.b32.xlu2 %v209_v55, %s1072_s26  ;;  %v892_v56 = vmul.f32 -1.442695, %v209_v55 }
 0x294   :  { %934 = vpow2.f32 %v892_v56 }
 0x29a   :  { %v935_v57 = vpop.eup %934 }
 0x29b   :  { %v213_v58 = vadd.f32 1.0, %v935_v57 }
 0x29d   :  { %936 = vrcp.f32 %v213_v58  ;;  %v225_v18 = vand.u32 2147483648, %v213_v58  ;;  %vm219_vm8 = vweird.f32 %v213_v58  ;;  %v223_v19 = vand.u32 2147483647, %v213_v58 }
 0x29f   :  { %v226_v21 = vor.u32 1.1754944e-38, %v225_v18  ;;  %vm224_vm10 = vcmp.eq.f32.partialorder %v223_v19, 8.507059e+37 }
 0x2a3   :  { %v937_v59 = vpop.eup %936 }
 0x2a4   :  { %v215_v60 = vmul.f32 %v937_v59, %v213_v58  ;;  %vm220_vm7 = vweird.f32 %v937_v59 }
 0x2a5   :  { %vm221_vm9 = vmor %vm219_vm8, %vm220_vm7 }
 0x2a6   :  { %v216_v61 = vsub.f32 1.0, %v215_v60 }
 0x2a8   :  { %v217_v62 = vmul.f32 %v937_v59, %v216_v61 }
 0x2aa   :  { %v218_v17 = vadd.f32 %v937_v59, %v217_v62 }
 0x2ac   :  { %v222_v20 = vsel %vm221_vm9, %v937_v59, %v218_v17 }
 0x2ad   :  { %v227_v23 = vsel %vm224_vm10, %v226_v21, %v222_v20 }
 0x2ae   :  { %v235_v25 = vmul.f32 %v227_v23, %v149_v45  ;;  %v244_v29 = vrot.slane %v227_v23, 2 }
 0x2ec   :  { %v231_v63 = vpop.permute.xlu2 %230 }
 0x2ed   :  { %v232_v0 = vrot.slane %v231_v63, 2 }
 0x2ef   :  { %938 = vtanh.f32 %v232_v0 }
 0x2f5   :  { %v939_v22 = vpop.eup %938 }
 0x2f6   :  { %v236_v24 = vmul.f32 %v939_v22, %v227_v23 }
 0x2f8   :  { %238 = vrot.lane.b32.xlu2 %v236_v24, %s1072_s26 }
 0x352   :  { %v239_v26 = vpop.permute.xlu2 %238 }
 0x353   :  { %v241_v27 = vadd.f32 %v239_v26, %v235_v25 }
 0x355   :  { %940 = vtanh.f32 %v241_v27 }
 0x35b   :  { %v941_v28 = vpop.eup %940 }
 0x35c   :  { %247 = vrot.lane.b32.xlu0 %v941_v28, %s1072_s26 }
 0x3ce   :  { %v248_v30 = vpop.permute.xlu0 %247 }
 0x3cf   :  { %v250_v31 = vmul.f32 %v248_v30, %v244_v29  ;;  %v901_v30 = vld [vmem:[%s1381_s0 + $0x10] sm:$0xf] }
 0x3d1   :  { %894 = vmatmul.msk.f32.vlgmr.msrb.gmra.mxu0 %vm63_vm1, %v250_v31  ;;  %895 = vmatmul.msk.f32.vlgmr.msrb.gmra.mxu1 %vm63_vm1, %v250_v31 }
 0x3d2   :  { %632 = vmatpush.msrb.mxu0 %v1112_v2  ;;  %652 = vmatpush.msrb.mxu1 %v1110_v1 }
 0x3d4   :  { %633 = vmatpush.msrb.mxu0 %v1118_v4  ;;  %653 = vmatpush.msrb.mxu1 %v1114_v3 }
 0x3d6   :  { %634 = vmatpush.msrb.mxu0 %v1122_v6  ;;  %654 = vmatpush.msrb.mxu1 %v1120_v5 }
 0x3d8   :  { %635 = vmatpush.msrb.mxu0 %v1130_v8  ;;  %655 = vmatpush.msrb.mxu1 %v1128_v7 }
 0x3da   :  { %636 = vmatpush.msrb.mxu0 %v1138_v10  ;;  %656 = vmatpush.msrb.mxu1 %v1136_v9 }
 0x3dc   :  { %637 = vmatpush.msrb.mxu0 %v1146_v12  ;;  %657 = vmatpush.msrb.mxu1 %v1144_v11 }
 0x3de   :  { %638 = vmatpush.msrb.mxu0 %v1154_v14  ;;  %658 = vmatpush.msrb.mxu1 %v1152_v13 }
 0x3e0   :  { %639 = vmatpush.msrb.mxu0 %v1162_v16  ;;  %659 = vmatpush.msrb.mxu1 %v1160_v15 }
 0x44e   :  { %v293_v32 = vpop.f32.mrf.mxu1  ;;  %v273_v35 = vpop.f32.mrf.mxu0 }
 0x44f   :  { %v298_v33 = vrot.slane %v293_v32, 6 }
 0x451   :  { %v299_v36 = vsel %vm110_vm2, %v273_v35, %v298_v33 }
 0x452   :  { %v301_v37 = vadd.f32 %v893_v34, %v299_v36 }
 0x454   :  { %322 = vrot.lane.b32.xlu1 %v301_v37, %s1072_s26  ;;  %v896_v38 = vmul.f32 -1.442695, %v301_v37 }
 0x456   :  { %942 = vpow2.f32 %v896_v38 }
 0x45c   :  { %v943_v39 = vpop.eup %942 }
 0x45d   :  { %v305_v40 = vadd.f32 1.0, %v943_v39 }
 0x45f   :  { %944 = vrcp.f32 %v305_v40  ;;  %v317_v48 = vand.u32 2147483648, %v305_v40  ;;  %vm311_vm12 = vweird.f32 %v305_v40  ;;  %v315_v49 = vand.u32 2147483647, %v305_v40 }
 0x461   :  { %v318_v51 = vor.u32 1.1754944e-38, %v317_v48  ;;  %vm316_vm14 = vcmp.eq.f32.partialorder %v315_v49, 8.507059e+37 }
 0x465   :  { %v945_v41 = vpop.eup %944 }
 0x466   :  { %v307_v42 = vmul.f32 %v945_v41, %v305_v40  ;;  %vm312_vm11 = vweird.f32 %v945_v41 }
 0x467   :  { %vm313_vm13 = vmor %vm311_vm12, %vm312_vm11 }
 0x468   :  { %v308_v43 = vsub.f32 1.0, %v307_v42 }
 0x46a   :  { %v309_v44 = vmul.f32 %v945_v41, %v308_v43 }
 0x46c   :  { %v310_v47 = vadd.f32 %v945_v41, %v309_v44 }
 0x46e   :  { %v314_v50 = vsel %vm313_vm13, %v945_v41, %v310_v47 }
 0x46f   :  { %v319_v53 = vsel %vm316_vm14, %v318_v51, %v314_v50 }
 0x470   :  { %v327_v55 = vmul.f32 %v319_v53, %v241_v27  ;;  %v336_v59 = vrot.slane %v319_v53, 2 }
 0x4c6   :  { %v323_v45 = vpop.permute.xlu1 %322 }
 0x4c7   :  { %v324_v46 = vrot.slane %v323_v45, 2 }
 0x4c9   :  { %946 = vtanh.f32 %v324_v46 }
 0x4cf   :  { %v947_v52 = vpop.eup %946 }
 0x4d0   :  { %v328_v54 = vmul.f32 %v947_v52, %v319_v53 }
 0x4d2   :  { %330 = vrot.lane.b32.xlu2 %v328_v54, %s1072_s26 }
 0x52c   :  { %v331_v56 = vpop.permute.xlu2 %330 }
 0x52d   :  { %v333_v57 = vadd.f32 %v331_v56, %v327_v55 }
 0x52f   :  { %948 = vtanh.f32 %v333_v57 }
 0x535   :  { %v949_v58 = vpop.eup %948 }
 0x536   :  { %339 = vrot.lane.b32.xlu0 %v949_v58, %s1072_s26 }
 0x5a8   :  { %v340_v60 = vpop.permute.xlu0 %339 }
 0x5a9   :  { %v342_v61 = vmul.f32 %v340_v60, %v336_v59  ;;  %v905_v60 = vld [vmem:[%s1381_s0 + $0x14] sm:$0xf] }
 0x5ab   :  { %898 = vmatmul.msk.f32.vlgmr.msrb.gmra.mxu2 %vm63_vm1, %v342_v61  ;;  %899 = vmatmul.msk.f32.vlgmr.msrb.gmra.mxu3 %vm63_vm1, %v342_v61 }
 0x5ac   :  { %724 = vmatpush.msrb.mxu2 %v1112_v2  ;;  %744 = vmatpush.msrb.mxu3 %v1110_v1 }
 0x5ae   :  { %725 = vmatpush.msrb.mxu2 %v1118_v4  ;;  %745 = vmatpush.msrb.mxu3 %v1114_v3  ;;  %v897_v3 = vld [vmem:[%s1381_s0 + $0xc] sm:$0xf] }
 0x5b0   :  { %726 = vmatpush.msrb.mxu2 %v1122_v6  ;;  %746 = vmatpush.msrb.mxu3 %v1120_v5 }
 0x5b2   :  { %727 = vmatpush.msrb.mxu2 %v1130_v8  ;;  %747 = vmatpush.msrb.mxu3 %v1128_v7 }
 0x5b4   :  { %728 = vmatpush.msrb.mxu2 %v1138_v10  ;;  %748 = vmatpush.msrb.mxu3 %v1136_v9 }
 0x5b6   :  { %729 = vmatpush.msrb.mxu2 %v1146_v12  ;;  %749 = vmatpush.msrb.mxu3 %v1144_v11 }
 0x5b8   :  { %730 = vmatpush.msrb.mxu2 %v1154_v14  ;;  %750 = vmatpush.msrb.mxu3 %v1152_v13 }
 0x5ba   :  { %731 = vmatpush.msrb.mxu2 %v1162_v16  ;;  %751 = vmatpush.msrb.mxu3 %v1160_v15 }
 0x62e   :  { %v385_v1 = vpop.f32.mrf.mxu3  ;;  %v365_v4 = vpop.f32.mrf.mxu2 }
 0x62f   :  { %v390_v2 = vrot.slane %v385_v1, 6 }
 0x631   :  { %v391_v5 = vsel %vm110_vm2, %v365_v4, %v390_v2 }
 0x632   :  { %v393_v6 = vadd.f32 %v897_v3, %v391_v5 }
 0x634   :  { %414 = vrot.lane.b32.xlu1 %v393_v6, %s1072_s26  ;;  %v900_v7 = vmul.f32 -1.442695, %v393_v6 }
 0x636   :  { %950 = vpow2.f32 %v900_v7 }
 0x63c   :  { %v951_v8 = vpop.eup %950 }
 0x63d   :  { %v397_v9 = vadd.f32 1.0, %v951_v8 }
 0x63f   :  { %952 = vrcp.f32 %v397_v9  ;;  %v409_v62 = vand.u32 2147483648, %v397_v9  ;;  %vm403_vm3 = vweird.f32 %v397_v9  ;;  %v407_v63 = vand.u32 2147483647, %v397_v9 }
 0x641   :  { %v410_v17 = vor.u32 1.1754944e-38, %v409_v62  ;;  %vm408_vm5 = vcmp.eq.f32.partialorder %v407_v63, 8.507059e+37 }
 0x645   :  { %v953_v10 = vpop.eup %952 }
 0x646   :  { %v399_v11 = vmul.f32 %v953_v10, %v397_v9  ;;  %vm404_vm15 = vweird.f32 %v953_v10 }
 0x647   :  { %vm405_vm4 = vmor %vm403_vm3, %vm404_vm15 }
 0x648   :  { %v400_v12 = vsub.f32 1.0, %v399_v11 }
 0x64a   :  { %v401_v13 = vmul.f32 %v953_v10, %v400_v12 }
 0x64c   :  { %v402_v16 = vadd.f32 %v953_v10, %v401_v13 }
 0x64e   :  { %v406_v0 = vsel %vm405_vm4, %v953_v10, %v402_v16 }
 0x64f   :  { %v411_v19 = vsel %vm408_vm5, %v410_v17, %v406_v0 }
 0x650   :  { %v419_v21 = vmul.f32 %v411_v19, %v333_v57  ;;  %v428_v25 = vrot.slane %v411_v19, 2 }
 0x6a6   :  { %v415_v14 = vpop.permute.xlu1 %414 }
 0x6a7   :  { %v416_v15 = vrot.slane %v415_v14, 2 }
 0x6a9   :  { %954 = vtanh.f32 %v416_v15 }
 0x6af   :  { %v955_v18 = vpop.eup %954 }
 0x6b0   :  { %v420_v20 = vmul.f32 %v955_v18, %v411_v19 }
 0x6b2   :  { %422 = vrot.lane.b32.xlu2 %v420_v20, %s1072_s26 }
 0x70c   :  { %v423_v22 = vpop.permute.xlu2 %422 }
 0x70d   :  { %v425_v23 = vadd.f32 %v423_v22, %v419_v21 }
 0x70f   :  { %956 = vtanh.f32 %v425_v23 }
 0x715   :  { %v957_v24 = vpop.eup %956 }
 0x716   :  { %431 = vrot.lane.b32.xlu0 %v957_v24, %s1072_s26 }
 0x788   :  { %v432_v26 = vpop.permute.xlu0 %431 }
 0x789   :  { %v434_v27 = vmul.f32 %v432_v26, %v428_v25  ;;  %v909_v26 = vld [vmem:[%s1381_s0 + $0x18] sm:$0xf] }
 0x78b   :  { %902 = vmatmul.msk.f32.vlgmr.msra.gmra.mxu0 %vm63_vm1, %v434_v27  ;;  %903 = vmatmul.msk.f32.vlgmr.msra.gmra.mxu1 %vm63_vm1, %v434_v27 }
 0x808   :  { %v477_v28 = vpop.f32.mrf.mxu1  ;;  %v457_v31 = vpop.f32.mrf.mxu0 }
 0x809   :  { %v482_v29 = vrot.slane %v477_v28, 6 }
 0x80b   :  { %v483_v32 = vsel %vm110_vm2, %v457_v31, %v482_v29 }
 0x80c   :  { %v485_v33 = vadd.f32 %v901_v30, %v483_v32 }
 0x80e   :  { %506 = vrot.lane.b32.xlu1 %v485_v33, %s1072_s26  ;;  %v904_v34 = vmul.f32 -1.442695, %v485_v33 }
 0x810   :  { %958 = vpow2.f32 %v904_v34 }
 0x816   :  { %v959_v35 = vpop.eup %958 }
 0x817   :  { %v489_v36 = vadd.f32 1.0, %v959_v35 }
 0x819   :  { %960 = vrcp.f32 %v489_v36  ;;  %v501_v44 = vand.u32 2147483648, %v489_v36  ;;  %vm495_vm7 = vweird.f32 %v489_v36  ;;  %v499_v45 = vand.u32 2147483647, %v489_v36 }
 0x81b   :  { %v502_v47 = vor.u32 1.1754944e-38, %v501_v44  ;;  %vm500_vm9 = vcmp.eq.f32.partialorder %v499_v45, 8.507059e+37 }
 0x81f   :  { %v961_v37 = vpop.eup %960 }
 0x820   :  { %v491_v38 = vmul.f32 %v961_v37, %v489_v36  ;;  %vm496_vm6 = vweird.f32 %v961_v37 }
 0x821   :  { %vm497_vm8 = vmor %vm495_vm7, %vm496_vm6 }
 0x822   :  { %v492_v39 = vsub.f32 1.0, %v491_v38 }
 0x824   :  { %v493_v40 = vmul.f32 %v961_v37, %v492_v39 }
 0x826   :  { %v494_v43 = vadd.f32 %v961_v37, %v493_v40 }
 0x828   :  { %v498_v46 = vsel %vm497_vm8, %v961_v37, %v494_v43  ;;  %vm851_vm8 = vcmask 41984  }
 0x829   :  { %v503_v49 = vsel %vm500_vm9, %v502_v47, %v498_v46 }
 0x82a   :  { %v511_v51 = vmul.f32 %v503_v49, %v425_v23  ;;  %v520_v55 = vrot.slane %v503_v49, 2 }
 0x880   :  { %v507_v41 = vpop.permute.xlu1 %506 }
 0x881   :  { %v508_v42 = vrot.slane %v507_v41, 2 }
 0x883   :  { %962 = vtanh.f32 %v508_v42 }
 0x889   :  { %v963_v48 = vpop.eup %962 }
 0x88a   :  { %v512_v50 = vmul.f32 %v963_v48, %v503_v49 }
 0x88c   :  { %514 = vrot.lane.b32.xlu2 %v512_v50, %s1072_s26 }
 0x8e6   :  { %v515_v52 = vpop.permute.xlu2 %514 }
 0x8e7   :  { %v517_v53 = vadd.f32 %v515_v52, %v511_v51 }
 0x8e9   :  { %964 = vtanh.f32 %v517_v53 }
 0x8ef   :  { %v965_v54 = vpop.eup %964 }
 0x8f0   :  { %523 = vrot.lane.b32.xlu0 %v965_v54, %s1072_s26 }
 0x962   :  { %v524_v56 = vpop.permute.xlu0 %523 }
 0x963   :  { %v526_v57 = vmul.f32 %v524_v56, %v520_v55  ;;  %v913_v56 = vld [vmem:[%s1381_s0 + $0x1c] sm:$0xf] }
 0x965   :  { %906 = vmatmul.msk.f32.vlgmr.msra.gmra.mxu2 %vm63_vm1, %v526_v57  ;;  %907 = vmatmul.msk.f32.vlgmr.msra.gmra.mxu3 %vm63_vm1, %v526_v57 }
 0x9e8   :  { %v569_v58 = vpop.f32.mrf.mxu3  ;;  %v549_v61 = vpop.f32.mrf.mxu2 }
 0x9e9   :  { %v574_v59 = vrot.slane %v569_v58, 6 }
 0x9eb   :  { %v575_v1 = vsel %vm110_vm2, %v549_v61, %v574_v59 }
 0x9ec   :  { %v577_v2 = vadd.f32 %v905_v60, %v575_v1 }
 0x9ee   :  { %598 = vrot.lane.b32.xlu1 %v577_v2, %s1072_s26  ;;  %v908_v3 = vmul.f32 -1.442695, %v577_v2 }
 0x9f0   :  { %966 = vpow2.f32 %v908_v3 }
 0x9f6   :  { %v967_v4 = vpop.eup %966 }
 0x9f7   :  { %v581_v5 = vadd.f32 1.0, %v967_v4 }
 0x9f9   :  { %968 = vrcp.f32 %v581_v5  ;;  %v593_v13 = vand.u32 2147483648, %v581_v5  ;;  %vm587_vm11 = vweird.f32 %v581_v5  ;;  %v591_v14 = vand.u32 2147483647, %v581_v5 }
 0x9fb   :  { %v594_v16 = vor.u32 1.1754944e-38, %v593_v13  ;;  %vm592_vm13 = vcmp.eq.f32.partialorder %v591_v14, 8.507059e+37 }
 0x9ff   :  { %v969_v6 = vpop.eup %968 }
 0xa00   :  { %v583_v7 = vmul.f32 %v969_v6, %v581_v5  ;;  %vm588_vm10 = vweird.f32 %v969_v6 }
 0xa01   :  { %vm589_vm12 = vmor %vm587_vm11, %vm588_vm10 }
 0xa02   :  { %v584_v8 = vsub.f32 1.0, %v583_v7 }
 0xa04   :  { %v585_v9 = vmul.f32 %v969_v6, %v584_v8 }
 0xa06   :  { %v586_v12 = vadd.f32 %v969_v6, %v585_v9 }
 0xa08   :  { %v590_v15 = vsel %vm589_vm12, %v969_v6, %v586_v12 }
 0xa09   :  { %v595_v63 = vsel %vm592_vm13, %v594_v16, %v590_v15  ;;  %v823_v16 = vld [vmem:[%s1383_s2 + $0x38] sm:$0xff] }
 0xa0a   :  { %v603_v17 = vmul.f32 %v595_v63, %v517_v53  ;;  %v612_v21 = vrot.slane %v595_v63, 2  ;;  %839 = vmatpush.msra.mxu0 %v823_v16 }
 0xa60   :  { %v599_v10 = vpop.permute.xlu1 %598 }
 0xa61   :  { %v600_v11 = vrot.slane %v599_v10, 2 }
 0xa63   :  { %970 = vtanh.f32 %v600_v11 }
 0xa69   :  { %v971_v62 = vpop.eup %970 }
 0xa6a   :  { %v604_v0 = vmul.f32 %v971_v62, %v595_v63  ;;  %v822_v62 = vld [vmem:[%s1383_s2 + $0x30] sm:$0xff]  ;;  %v821_v63 = vld [vmem:[%s1383_s2 + $0x28] sm:$0xff] }
 0xa6b   :  { %840 = vmatpush.msra.mxu0 %v822_v62 }
 0xa6c   :  { %606 = vrot.lane.b32.xlu2 %v604_v0, %s1072_s26  ;;  %v820_v0 = vld [vmem:[%s1383_s2 + $0x20] sm:$0xff] }
 0xa6d   :  { %841 = vmatpush.msra.mxu0 %v821_v63 }
 0xa6f   :  { %842 = vmatpush.msra.mxu0 %v820_v0 }
 0xac6   :  { %v607_v18 = vpop.permute.xlu2 %606 }
 0xac7   :  { %v609_v19 = vadd.f32 %v607_v18, %v603_v17  ;;  %v819_v17 = vld [vmem:[%s1383_s2 + $0x18] sm:$0xff]  ;;  %v818_v18 = vld [vmem:[%s1383_s2 + $0x10] sm:$0xff] }
 0xac8   :  { %843 = vmatpush.msra.mxu0 %v819_v17 }
 0xac9   :  { %972 = vtanh.f32 %v609_v19 }
 0xaca   :  { %844 = vmatpush.msra.mxu0 %v818_v18 }
 0xacf   :  { %v973_v20 = vpop.eup %972 }
 0xad0   :  { %615 = vrot.lane.b32.xlu0 %v973_v20, %s1072_s26 }
 0xb42   :  { %v616_v22 = vpop.permute.xlu0 %615 }
 0xb43   :  { %v618_v23 = vmul.f32 %v616_v22, %v612_v21 }
 0xb45   :  { %910 = vmatmul.msk.f32.vlgmr.msrb.gmra.mxu0 %vm63_vm1, %v618_v23  ;;  %911 = vmatmul.msk.f32.vlgmr.msrb.gmra.mxu1 %vm63_vm1, %v618_v23 }
 0xbc2   :  { %v661_v24 = vpop.f32.mrf.mxu1  ;;  %v641_v27 = vpop.f32.mrf.mxu0 }
 0xbc3   :  { %v666_v25 = vrot.slane %v661_v24, 6 }
 0xbc5   :  { %v667_v28 = vsel %vm110_vm2, %v641_v27, %v666_v25  ;;  %v816_v25 = vld [vmem:[%s1383_s2] sm:$0xff] }
 0xbc6   :  { %v669_v29 = vadd.f32 %v909_v26, %v667_v28 }
 0xbc8   :  { %690 = vrot.lane.b32.xlu1 %v669_v29, %s1072_s26  ;;  %v912_v30 = vmul.f32 -1.442695, %v669_v29 }
 0xbca   :  { %974 = vpow2.f32 %v912_v30  ;;  %v925_v30 = vld [vmem:[%s1384_s3] ss:$0 sm:$0xff] }
 0xbd0   :  { %v975_v31 = vpop.eup %974 }
 0xbd1   :  { %v673_v32 = vadd.f32 1.0, %v975_v31 }
 0xbd3   :  { %976 = vrcp.f32 %v673_v32  ;;  %v685_v40 = vand.u32 2147483648, %v673_v32  ;;  %vm679_vm15 = vweird.f32 %v673_v32  ;;  %v683_v41 = vand.u32 2147483647, %v673_v32 }
 0xbd5   :  { %v686_v43 = vor.u32 1.1754944e-38, %v685_v40  ;;  %vm684_vm4 = vcmp.eq.f32.partialorder %v683_v41, 8.507059e+37 }
 0xbd9   :  { %v977_v33 = vpop.eup %976 }
 0xbda   :  { %v675_v34 = vmul.f32 %v977_v33, %v673_v32  ;;  %vm680_vm14 = vweird.f32 %v977_v33 }
 0xbdb   :  { %vm681_vm3 = vmor %vm679_vm15, %vm680_vm14 }
 0xbdc   :  { %v676_v35 = vsub.f32 1.0, %v675_v34 }
 0xbde   :  { %v677_v36 = vmul.f32 %v977_v33, %v676_v35 }
 0xbe0   :  { %v678_v39 = vadd.f32 %v977_v33, %v677_v36 }
 0xbe2   :  { %v682_v42 = vsel %vm681_vm3, %v977_v33, %v678_v39 }
 0xbe3   :  { %v687_v45 = vsel %vm684_vm4, %v686_v43, %v682_v42 }
 0xbe4   :  { %v695_v47 = vmul.f32 %v687_v45, %v609_v19  ;;  %v704_v51 = vrot.slane %v687_v45, 2  ;;  %v817_v19 = vld [vmem:[%s1383_s2 + $0x8] sm:$0xff] }
 0xbe5   :  { %845 = vmatpush.msra.mxu0 %v817_v19 }
 0xbe7   :  { %846 = vmatpush.msra.mxu0 %v816_v25 }
 0xc3a   :  { %v691_v37 = vpop.permute.xlu1 %690 }
 0xc3b   :  { %v692_v38 = vrot.slane %v691_v37, 2 }
 0xc3d   :  { %978 = vtanh.f32 %v692_v38 }
 0xc43   :  { %v979_v44 = vpop.eup %978 }
 0xc44   :  { %v696_v46 = vmul.f32 %v979_v44, %v687_v45 }
 0xc46   :  { %698 = vrot.lane.b32.xlu2 %v696_v46, %s1072_s26 }
 0xca0   :  { %v699_v48 = vpop.permute.xlu2 %698 }
 0xca1   :  { %v701_v49 = vadd.f32 %v699_v48, %v695_v47 }
 0xca3   :  { %980 = vtanh.f32 %v701_v49 }
 0xca9   :  { %v981_v50 = vpop.eup %980 }
 0xcaa   :  { %707 = vrot.lane.b32.xlu0 %v981_v50, %s1072_s26 }
 0xd1c   :  { %v708_v52 = vpop.permute.xlu0 %707 }
 0xd1d   :  { %v710_v53 = vmul.f32 %v708_v52, %v704_v51 }
 0xd1f   :  { %914 = vmatmul.msk.f32.vlgmr.msrb.gmra.mxu2 %vm63_vm1, %v710_v53  ;;  %915 = vmatmul.msk.f32.vlgmr.msrb.gmra.mxu3 %vm63_vm1, %v710_v53 }
 0xda2   :  { %v753_v54 = vpop.f32.mrf.mxu3  ;;  %v733_v57 = vpop.f32.mrf.mxu2 }
 0xda3   :  { %v758_v55 = vrot.slane %v753_v54, 6 }
 0xda5   :  { %v759_v58 = vsel %vm110_vm2, %v733_v57, %v758_v55 }
 0xda6   :  { %v761_v59 = vadd.f32 %v913_v56, %v759_v58 }
 0xda8   :  { %782 = vrot.lane.b32.xlu1 %v761_v59, %s1072_s26  ;;  %v916_v60 = vmul.f32 -1.442695, %v761_v59 }
 0xdaa   :  { %982 = vpow2.f32 %v916_v60 }
 0xdb0   :  { %v983_v61 = vpop.eup %982 }
 0xdb1   :  { %v765_v1 = vadd.f32 1.0, %v983_v61 }
 0xdb3   :  { %984 = vrcp.f32 %v765_v1  ;;  %v777_v9 = vand.u32 2147483648, %v765_v1  ;;  %vm771_vm6 = vweird.f32 %v765_v1  ;;  %v775_v10 = vand.u32 2147483647, %v765_v1 }
 0xdb5   :  { %v778_v12 = vor.u32 1.1754944e-38, %v777_v9  ;;  %vm776_vm7 = vcmp.eq.f32.partialorder %v775_v10, 8.507059e+37 }
 0xdb9   :  { %v985_v2 = vpop.eup %984 }
 0xdba   :  { %v767_v3 = vmul.f32 %v985_v2, %v765_v1  ;;  %vm772_vm5 = vweird.f32 %v985_v2 }
 0xdbb   :  { %vm773_vm2 = vmor %vm771_vm6, %vm772_vm5 }
 0xdbc   :  { %v768_v4 = vsub.f32 1.0, %v767_v3 }
 0xdbe   :  { %v769_v5 = vmul.f32 %v985_v2, %v768_v4 }
 0xdc0   :  { %v770_v8 = vadd.f32 %v985_v2, %v769_v5 }
 0xdc2   :  { %v774_v11 = vsel %vm773_vm2, %v985_v2, %v770_v8 }
 0xdc3   :  { %v779_v14 = vsel %vm776_vm7, %v778_v12, %v774_v11 }
 0xdc4   :  { %v787_v20 = vmul.f32 %v779_v14, %v701_v49  ;;  %v796_v26 = vrot.slane %v779_v14, 2 }
 0xe1a   :  { %v783_v6 = vpop.permute.xlu1 %782 }
 0xe1b   :  { %v784_v7 = vrot.slane %v783_v6, 2 }
 0xe1d   :  { %986 = vtanh.f32 %v784_v7 }
 0xe23   :  { %v987_v13 = vpop.eup %986 }
 0xe24   :  { %v788_v15 = vmul.f32 %v987_v13, %v779_v14 }
 0xe26   :  { %790 = vrot.lane.b32.xlu2 %v788_v15, %s1072_s26 }
 0xe80   :  { %v791_v21 = vpop.permute.xlu2 %790 }
 0xe81   :  { %v793_v22 = vadd.f32 %v791_v21, %v787_v20 }
 0xe83   :  { %988 = vtanh.f32 %v793_v22  ;;  %806 = vst [vmem:[#allocation1] ss:$4 sm:$0xff] %v793_v22 }
 0xe89   :  { %v989_v23 = vpop.eup %988 }
 0xe8a   :  { %799 = vrot.lane.b32.xlu0 %v989_v23, %s1072_s26  ;;  %v807_v24 = vld.sshfl [vmem:[#allocation1] sm:$0xff pattern:$0x73625140] }
 0xe8b   :  { %808 = vrot.lane.b32.xlu1 %v807_v24, %s1072_s26 }
 0xefc   :  { %v800_v27 = vpop.permute.xlu0 %799 }
 0xefd   :  { %v802_v28 = vmul.f32 %v800_v27, %v796_v26  ;;  %v809_v29 = vpop.permute.xlu1 %808 }
 0xefe   :  { %811 = vst.msk [vmem:[#allocation3] sm:$0x3] %vm41_vm0, %v809_v29 }
 0xeff   :  { %804 = vst.msk [vmem:[#allocation2] sm:$0x3] %vm41_vm0, %v802_v28  ;;  %917 = vmatmul.msk.f32.vlgmr.msra.gmra.mxu0 %vm63_vm1, %v802_v28 }
 0xf00   :  { %815 = vst.msk [vmem:[#allocation7] sm:$0x3] %vm41_vm0, %v802_v28 }
 0xf01   :  { %863 = dma.vmem_to_hbm [thread:$0]  %s859_s10, 32, %s861_s8, [#allocation6]  }
 0xf7c   :  { %v848_v31 = vpop.f32.mrf.mxu0 }
 0xf7d   :  { %v849_v32 = vadd.f32 %v925_v30, %v848_v31 }
 0xf7f   :  { %852 = vst.msk [vmem:[#allocation8] sm:$0x3] %vm851_vm8, %v849_v32 }
 0xf80   :  { %874 = dma.vmem_to_hbm [thread:$0]  %s870_s12, 32, %s872_s14, [#allocation9]  }
 0xf81   :  { %1064 = dma.done.wait [#allocation6], 32  }
 0xf82   :  { %1065 = vsyncadd [#allocation6], 4294967264 }
 0xf83   :  { %1066 = dma.done.wait [#allocation9], 32  }
 0xf84   :  { %1067 = vsyncadd [#allocation9], 4294967264 }
 0xf85   :  { %883 = vsyncpa [#allocation5], 1 }
 0xf86   :  { %884 = vsyncpa [#allocation6], 1 }
 0xf87   :  { %885 = vsyncpa [#allocation9], 1 }

</bundles_post_ra>
